<compile_context>
chip_gen: v7x
topology: tpu7x:2x2x1
jax: 0.10.0
libtpu: 0.0.40
codegen_flags: <defaults>
</compile_context>

<pallas_src>
import jax
import jax.numpy as jnp
from jax.experimental import pallas as pl
from jax.experimental.pallas import tpu as pltpu


def _round_up(x, m):
    return ((x + m - 1) // m) * m


def dqn_kernel(x_ref, w1_ref, b1_ref, w2_ref, b2_ref, q_ref):
    # hidden = tanh(x @ W1 + b1); f32 MXU accumulate, f32 tanh (v5e-safe).
    x = x_ref[...]
    h = jnp.tanh(
        jnp.dot(x, w1_ref[...], preferred_element_type=jnp.float32) + b1_ref[...]
    )
    # q = hidden @ W2 + b2
    q = (
        jnp.dot(h.astype(w2_ref.dtype), w2_ref[...],
                preferred_element_type=jnp.float32)
        + b2_ref[...]
    )
    q_ref[...] = q.astype(q_ref.dtype)


def prepare_params(w1, b1, w2, b2, *, compute_dtype=jnp.float32):
    """One-time layout plumbing (keep OUT of the per-step forward path).

    PyTorch nn.Linear layout in:  w1 [width, n_states], b1 [width],
                                  w2 [n_actions, width], b2 [n_actions].
    Returns pre-transposed, lane-padded params:
      w1p [n_states, Wp] (compute_dtype), b1p [1, Wp] (f32),
      w2p [Wp, Ap]       (compute_dtype), b2p [1, Ap] (f32)
    with Wp = round_up(width,128), Ap = round_up(n_actions,128). Padding is
    zeros, so padded hidden units are tanh(0)=0 and padded Q columns are 0.
    """
    width, n_states = w1.shape
    n_actions = w2.shape[0]
    wp = _round_up(width, 128)
    ap = _round_up(n_actions, 128)

    w1p = (jnp.zeros((n_states, wp), compute_dtype)
           .at[:, :width].set(w1.T.astype(compute_dtype)))
    b1p = (jnp.zeros((1, wp), jnp.float32)
           .at[:, :width].set(b1.astype(jnp.float32).reshape(1, width)))
    w2p = (jnp.zeros((wp, ap), compute_dtype)
           .at[:width, :n_actions].set(w2.T.astype(compute_dtype)))
    b2p = (jnp.zeros((1, ap), jnp.float32)
           .at[:, :n_actions].set(b2.astype(jnp.float32).reshape(1, n_actions)))
    return w1p, b1p, w2p, b2p


def dqn_forward(x, w1p, b1p, w2p, b2p, n_actions, *, block_b=512):
    """x: [B, n_states]; params from prepare_params(). Returns [B, n_actions] f32."""
    B, n_states = x.shape
    wp = w1p.shape[1]
    ap = w2p.shape[1]
    compute_dtype = w1p.dtype

    # Batch tile: multiple of 8 (sublane), capped at block_b; pad B to a
    # multiple of the tile so every grid step sees a full, aligned block.
    bp = max(8, _round_up(B, 8))
    tb = min(block_b, bp)
    bp = _round_up(bp, tb)

    x = x.astype(compute_dtype)
    if bp != B:
        x = jnp.pad(x, ((0, bp - B), (0, 0)))

    grid = (bp // tb,)

    q = pl.pallas_call(
        dqn_kernel,
        out_shape=jax.ShapeDtypeStruct((bp, ap), jnp.float32),
        grid_spec=pltpu.PrefetchScalarGridSpec(
            num_scalar_prefetch=0,
            grid=grid,
            in_specs=[
                pl.BlockSpec((tb, n_states), lambda i: (i, 0)),   # x: tiled over batch
                pl.BlockSpec((n_states, wp), lambda i: (0, 0)),   # W1: resident
                pl.BlockSpec((1, wp), lambda i: (0, 0)),          # b1: resident
                pl.BlockSpec((wp, ap), lambda i: (0, 0)),         # W2: resident
                pl.BlockSpec((1, ap), lambda i: (0, 0)),          # b2: resident
            ],
            out_specs=pl.BlockSpec((tb, ap), lambda i: (i, 0)),   # lane-dense (Ap=128k)
        ),
        compiler_params=pltpu.CompilerParams(
            dimension_semantics=("parallel",),
        ),
    )(x, w1p, b1p, w2p, b2p)

    return q[:B, :n_actions]


def init_params(key, n_states, width, n_actions):
    """Matches the PyTorch init: weights ~ N(0, 1/sqrt(fan_in)), biases = 0."""
    k1, k2 = jax.random.split(key)
    w1 = (jax.random.normal(k1, (width, n_states), jnp.float32)
          * (1.0 / jnp.sqrt(jnp.float32(n_states))))
    b1 = jnp.zeros((width,), jnp.float32)
    w2 = (jax.random.normal(k2, (n_actions, width), jnp.float32)
          * (1.0 / jnp.sqrt(jnp.float32(width))))
    b2 = jnp.zeros((n_actions,), jnp.float32)
    return w1, b1, w2, b2


# TODO(synk): epsilon-greedy action(), MSE loss, and the Adam optimizer are
# host-side training logic, not part of the forward pass; not implemented here.

if __name__ == "__main__":
    key = jax.random.PRNGKey(0)
    kx, kp = jax.random.split(key)

    B, n_states, width, n_actions = 4, 16, 32, 4
    x = jax.random.normal(kx, (B, n_states), jnp.float32)
    w1, b1, w2, b2 = init_params(kp, n_states, width, n_actions)

    ref = jnp.tanh(x @ w1.T + b1) @ w2.T + b2

    # f32 path (tight numerical check).
    params_f32 = prepare_params(w1, b1, w2, b2, compute_dtype=jnp.float32)
    q = jax.block_until_ready(dqn_forward(x, *params_f32, n_actions))
    assert q.shape == (B, n_actions)
    assert jnp.allclose(q, ref, atol=1e-5, rtol=1e-5)

    # bf16 MXU-input path (v6e/v7x); f32 accumulate/tanh keep numerics sane.
    params_bf16 = prepare_params(w1, b1, w2, b2, compute_dtype=jnp.bfloat16)
    q_bf16 = jax.block_until_ready(dqn_forward(x, *params_bf16, n_actions))
    assert q_bf16.shape == (B, n_actions)
    assert jnp.allclose(q_bf16, ref, atol=5e-2, rtol=5e-2)

    # Larger, non-divisible batch to exercise batch tiling + pipelining.
    Bl = 1000
    xl = jax.random.normal(jax.random.PRNGKey(1), (Bl, n_states), jnp.float32)
    ql = jax.block_until_ready(dqn_forward(xl, *params_f32, n_actions))
    refl = jnp.tanh(xl @ w1.T + b1) @ w2.T + b2
    assert ql.shape == (Bl, n_actions)
    assert jnp.allclose(ql, refl, atol=1e-5, rtol=1e-5)

    print("KERNEL_OK")
</pallas_src>

<mosaic_0001>
module attributes {stable_mosaic.version = 11 : i64} {
  func.func @dqn_kernel(%arg0: i32, %arg1: memref<8x16xf32, #tpu.memory_space<vmem>>, %arg2: memref<16x128xf32, #tpu.memory_space<vmem>>, %arg3: memref<1x128xf32, #tpu.memory_space<vmem>>, %arg4: memref<128x128xf32, #tpu.memory_space<vmem>>, %arg5: memref<1x128xf32, #tpu.memory_space<vmem>>, %arg6: memref<8x128xf32, #tpu.memory_space<vmem>>) attributes {dimension_semantics = [#tpu.dimension_semantics<parallel>], iteration_bounds = array<i64: 1>, scalar_prefetch = 0 : i64, scratch_operands = 0 : i64, tpu.core_type = #tpu.core_type<tc>, window_params = [{transform_indices = @transform_0, window_bounds = array<i64: 8, 16>}, {pipeline_mode = #tpu.pipeline_mode<synchronous>, transform_indices = @transform_1, window_bounds = array<i64: 16, 128>}, {pipeline_mode = #tpu.pipeline_mode<synchronous>, transform_indices = @transform_2, window_bounds = array<i64: 1, 128>}, {pipeline_mode = #tpu.pipeline_mode<synchronous>, transform_indices = @transform_3, window_bounds = array<i64: 128, 128>}, {pipeline_mode = #tpu.pipeline_mode<synchronous>, transform_indices = @transform_4, window_bounds = array<i64: 1, 128>}, {transform_indices = @transform_5, window_bounds = array<i64: 8, 128>}]} {
    %c0 = arith.constant 0 : index
    %c0_0 = arith.constant 0 : index
    %0 = vector.load %arg1[%c0, %c0_0] : memref<8x16xf32, #tpu.memory_space<vmem>>, vector<8x16xf32>
    %c0_1 = arith.constant 0 : index
    %c0_2 = arith.constant 0 : index
    %1 = vector.load %arg2[%c0_1, %c0_2] : memref<16x128xf32, #tpu.memory_space<vmem>>, vector<16x128xf32>
    %cst = arith.constant dense<0.000000e+00> : vector<8x128xf32>
    %2 = tpu.matmul %0, %1, %cst {dimension_numbers = #tpu.dot_dimension_numbers<[1], [0], [0], [1], [0, 0, 1, 1], [], []>} : vector<8x16xf32>, vector<16x128xf32>, vector<8x128xf32> -> vector<8x128xf32>
    %c0_3 = arith.constant 0 : index
    %c0_4 = arith.constant 0 : index
    %3 = vector.load %arg3[%c0_3, %c0_4] : memref<1x128xf32, #tpu.memory_space<vmem>>, vector<1x128xf32>
    %4 = vector.broadcast %3 : vector<1x128xf32> to vector<8x128xf32>
    %5 = arith.addf %2, %4 : vector<8x128xf32>
    %6 = math.tanh %5 : vector<8x128xf32>
    %c0_5 = arith.constant 0 : index
    %c0_6 = arith.constant 0 : index
    %7 = vector.load %arg4[%c0_5, %c0_6] : memref<128x128xf32, #tpu.memory_space<vmem>>, vector<128x128xf32>
    %cst_7 = arith.constant dense<0.000000e+00> : vector<8x128xf32>
    %8 = tpu.matmul %6, %7, %cst_7 {dimension_numbers = #tpu.dot_dimension_numbers<[1], [0], [0], [1], [0, 0, 1, 1], [], []>} : vector<8x128xf32>, vector<128x128xf32>, vector<8x128xf32> -> vector<8x128xf32>
    %c0_8 = arith.constant 0 : index
    %c0_9 = arith.constant 0 : index
    %9 = vector.load %arg5[%c0_8, %c0_9] : memref<1x128xf32, #tpu.memory_space<vmem>>, vector<1x128xf32>
    %10 = vector.broadcast %9 : vector<1x128xf32> to vector<8x128xf32>
    %11 = arith.addf %8, %10 : vector<8x128xf32>
    %c0_10 = arith.constant 0 : index
    %c0_11 = arith.constant 0 : index
    %12 = vector.load %arg6[%c0_10, %c0_11] : memref<8x128xf32, #tpu.memory_space<vmem>>, vector<8x128xf32>
    tpu.vector_store %arg6[%c0_10, %c0_11], %11 {strides = array<i32>} : memref<8x128xf32, #tpu.memory_space<vmem>>, vector<8x128xf32>,
    return
  }
  func.func @transform_0(%arg0: i32) -> (i32, i32) {
    %c0_i32 = arith.constant 0 : i32
    %c0_i32_0 = arith.constant 0 : i32
    return %arg0, %c0_i32 : i32, i32
  }
  func.func @transform_1(%arg0: i32) -> (i32, i32) {
    %c0_i32 = arith.constant 0 : i32
    %c0_i32_0 = arith.constant 0 : i32
    %c0_i32_1 = arith.constant 0 : i32
    return %c0_i32, %c0_i32_0 : i32, i32
  }
  func.func @transform_2(%arg0: i32) -> (i32, i32) {
    %c0_i32 = arith.constant 0 : i32
    %c0_i32_0 = arith.constant 0 : i32
    %c0_i32_1 = arith.constant 0 : i32
    return %c0_i32, %c0_i32_0 : i32, i32
  }
  func.func @transform_3(%arg0: i32) -> (i32, i32) {
    %c0_i32 = arith.constant 0 : i32
    %c0_i32_0 = arith.constant 0 : i32
    %c0_i32_1 = arith.constant 0 : i32
    return %c0_i32, %c0_i32_0 : i32, i32
  }
  func.func @transform_4(%arg0: i32) -> (i32, i32) {
    %c0_i32 = arith.constant 0 : i32
    %c0_i32_0 = arith.constant 0 : i32
    %c0_i32_1 = arith.constant 0 : i32
    return %c0_i32, %c0_i32_0 : i32, i32
  }
  func.func @transform_5(%arg0: i32) -> (i32, i32) {
    %c0_i32 = arith.constant 0 : i32
    %c0_i32_0 = arith.constant 0 : i32
    return %arg0, %c0_i32 : i32, i32
  }
}

</mosaic_0001>

<bundles_post_ra>
// kernel: tpu_custom_call.1
= control target key start
LH: loop header
LB: loop body
LE: loop exit
PB: predicated region body
PF: predicated region fallthrough
CT: control target
= control target key end

     0   :  { %10 = vsyncpa [#allocation3], 0  ;;  %s551_s0 = inlined_call_operand.hbm [shape: f32[8,16], index: 0, kind: input, shape index: {}]   ;;  %s552_s1 = inlined_call_operand.hbm [shape: f32[16,128], index: 1, kind: input, shape index: {}]   ;;  %s553_s2 = inlined_call_operand.vmem [shape: f32[1,128], index: 2, kind: input, shape index: {}]   ;;  %s554_s3 = inlined_call_operand.hbm [shape: f32[128,128], index: 3, kind: input, shape index: {}]   ;;  %s555_s4 = inlined_call_operand.vmem [shape: f32[1,128], index: 4, kind: input, shape index: {}]   ;;  %s556_s5 = inlined_call_operand.hbm [shape: f32[8,128], index: 5, kind: output, shape index: {}]  }
   0x1   :  { %11 = vsyncpa [#allocation6], 0 }
   0x2   :  { %12 = vsyncpa [#allocation4], 0  ;;  %s452_s18 = smov [#allocation5]   ;;  %s358_s22 = scalar_lea.hbm %s552_s1, 256 }
   0x3   :  { %s28_s19 = sshll.u32 %s452_s18, 4  ;;  %p359_p0 = scmp.ne.s32.totalorder %s552_s1, %s358_s22  ;;  %s29_s19 = int_to_ptr.vmem [resolvable:$true] %s28_s19 }
   0x4   :  { %p362_p1 = scmp.lt.u32.totalorder %s358_s22, %s552_s1 }
   0x6   :  { %p364_p2 = pnand %p362_p1, %p359_p0 }
   0x8   :  { %367 = shalt.err (!%p364_p2)
}
   0x9   :  { %s368_s27 = scalar_lea.vmem %s29_s19, 256  ;;  %p373_p4 = scmp.lt.s32.totalorder %s29_s19, %s29_s19 }
   0xa   :  { %p369_p3 = scmp.ne.s32.totalorder %s29_s19, %s368_s27  ;;  %p374_p5 = scmp.lt.s32.totalorder %s368_s27, %s368_s27 }
   0xc   :  { %p375_p6 = por %p374_p5, %p373_p4 }
   0xe   :  { %p376_p7 = pnand %p375_p6, %p369_p3 }
  0x10   :  { %379 = shalt.err (!%p376_p7)
}
  0x11   :  { %s453_s28 = smov 128   ;;  %s454_s29 = smov 8  }
  0x12   :  { %34 = dma.hbm_to_vmem [thread:$0]  %s552_s1, 256, %s29_s19, [#allocation6], %s453_s28, %s453_s28, %s454_s29  }
  0x13   :  { %s455_s7 = smov [#allocation2]   ;;  %s456_s9 = smov [#allocation7]  }
  0x14   :  { %s19_s8 = sshll.u32 %s455_s7, 4  ;;  %s42_s10 = sshll.u32 %s456_s9, 4  ;;  %s20_s8 = int_to_ptr.vmem [resolvable:$true] %s19_s8  ;;  %s43_s10 = int_to_ptr.vmem [resolvable:$true] %s42_s10 }
  0x15   :  { %s380_s13 = scalar_lea.hbm %s551_s0, 128 }
  0x16   :  { %p381_p8 = scmp.ne.s32.totalorder %s551_s0, %s380_s13  ;;  %p384_p9 = scmp.lt.u32.totalorder %s380_s13, %s551_s0 }
  0x18   :  { %p386_p10 = pnand %p384_p9, %p381_p8 }
  0x1a   :  { %389 = shalt.err (!%p386_p10)
}
  0x1b   :  { %s390_s1 = scalar_lea.vmem %s20_s8, 128  ;;  %p395_p12 = scmp.lt.s32.totalorder %s20_s8, %s20_s8 }
  0x1c   :  { %p391_p11 = scmp.ne.s32.totalorder %s20_s8, %s390_s1  ;;  %p396_p13 = scmp.lt.s32.totalorder %s390_s1, %s390_s1 }
  0x1e   :  { %p397_p0 = por %p396_p13, %p395_p12 }
  0x20   :  { %p398_p1 = pnand %p397_p0, %p391_p11 }
  0x22   :  { %401 = shalt.err (!%p398_p1)
}
  0x23   :  { %22 = dma.hbm_to_vmem [thread:$0]  %s551_s0, 128, %s20_s8, [#allocation3]  }
  0x24   :  { %s402_s22 = scalar_lea.hbm %s554_s3, 2048 }
  0x25   :  { %p403_p2 = scmp.ne.s32.totalorder %s554_s3, %s402_s22  ;;  %p406_p3 = scmp.lt.u32.totalorder %s402_s22, %s554_s3 }
  0x27   :  { %p408_p4 = pnand %p406_p3, %p403_p2 }
  0x29   :  { %411 = shalt.err (!%p408_p4)
}
  0x2a   :  { %s412_s27 = scalar_lea.vmem %s43_s10, 2048  ;;  %p417_p6 = scmp.lt.s32.totalorder %s43_s10, %s43_s10 }
  0x2b   :  { %p413_p5 = scmp.ne.s32.totalorder %s43_s10, %s412_s27  ;;  %p418_p7 = scmp.lt.s32.totalorder %s412_s27, %s412_s27 }
  0x2d   :  { %p419_p8 = por %p418_p7, %p417_p6 }
  0x2f   :  { %p420_p9 = pnand %p419_p8, %p413_p5 }
  0x31   :  { %423 = shalt.err (!%p420_p9)
}
  0x32   :  { %48 = dma.hbm_to_vmem [thread:$0]  %s554_s3, 2048, %s43_s10, [#allocation6], %s453_s28, %s453_s28, %s454_s29  }
  0x33   :  { %446 = dma.done.wait [#allocation3], 128  }
  0x34   :  { %447 = vsyncadd [#allocation3], 4294967168 }
  0x35   :  { %448 = dma.done.wait [#allocation6], 2304  }
  0x36   :  { %449 = vsyncadd [#allocation6], 4294964992  ;;  %v457_v0 = vmov 0.0|0.0   ;;  %vm458_vm0 = vmmov 0   ;;  %v459_v1 = vmov 0.0   ;;  %v61_v2 = vld [vmem:[#allocation5] sm:$0xff] }
  0x37   :  { %320 = vmatprep.subr.bf16.mxu0 %v457_v0  ;;  %282 = vmatprep.mubr.msk.f32.mxu0 %vm458_vm0, %v459_v1  ;;  %v62_v3 = vld [vmem:[#allocation5 + $0x8] sm:$0xff]  ;;  %v145_v5 = vld [vmem:[#allocation7] sm:$0xff]  ;;  %v146_v6 = vld [vmem:[#allocation7 + $0x8] sm:$0xff]  ;;  %vm70_vm1 = vcmask 130048   ;;  %s460_s7 = smov [#allocation8]  }
  0x38   :  { %323 = vmatprep.subr.bf16.mxu1 %v457_v0  ;;  %317 = vmatprep.mubr.msk.f32.mxu1 %vm458_vm0, %v459_v1  ;;  %v321_v4 = vpack.c.bf16 %v62_v3, %v61_v2  ;;  %v147_v7 = vld [vmem:[#allocation7 + $0x10] sm:$0xff]  ;;  %v324_v8 = vpack.c.bf16 %v146_v6, %v145_v5  ;;  %v148_v9 = vld [vmem:[#allocation7 + $0x18] sm:$0xff]  ;;  %v60_v10 = vld [vmem:[#allocation2] sm:$0xff]  ;;  %s245_s8 = sshll.u32 %s460_s7, 4  ;;  %s246_s8 = int_to_ptr.vmem [resolvable:$true] %s245_s8 }
  0x39   :  { %v327_v11 = vpack.c.bf16 %v148_v9, %v147_v7  ;;  %v149_v12 = vld [vmem:[#allocation7 + $0x20] sm:$0xff]  ;;  %v150_v13 = vld [vmem:[#allocation7 + $0x28] sm:$0xff]  ;;  %v151_v15 = vld [vmem:[#allocation7 + $0x30] sm:$0xff]  ;;  %s424_s9 = scalar_lea.vmem %s246_s8, 128  ;;  %p429_p11 = scmp.lt.s32.totalorder %s246_s8, %s246_s8 }
  0x3a   :  { %322 = vmatpush3.bf16.msra.mxu0 %v321_v4  ;;  %325 = vmatpush3.bf16.msra.mxu1 %v324_v8  ;;  %v330_v14 = vpack.c.bf16 %v150_v13, %v149_v12  ;;  %v152_v16 = vld [vmem:[#allocation7 + $0x38] sm:$0xff]  ;;  %v153_v18 = vld [vmem:[#allocation7 + $0x40] sm:$0xff]  ;;  %v154_v19 = vld [vmem:[#allocation7 + $0x48] sm:$0xff]  ;;  %p425_p10 = scmp.ne.s32.totalorder %s246_s8, %s424_s9  ;;  %p430_p12 = scmp.lt.s32.totalorder %s424_s9, %s424_s9 }
  0x3b   :  { %326 = vmatprep.subr.bf16.mxu1 %v457_v0  ;;  %v333_v17 = vpack.c.bf16 %v152_v16, %v151_v15  ;;  %v336_v20 = vpack.c.bf16 %v154_v19, %v153_v18  ;;  %v155_v21 = vld [vmem:[#allocation7 + $0x50] sm:$0xff]  ;;  %v156_v22 = vld [vmem:[#allocation7 + $0x58] sm:$0xff]  ;;  %v157_v24 = vld [vmem:[#allocation7 + $0x60] sm:$0xff] }
  0x3c   :  { %v339_v23 = vpack.c.bf16 %v156_v22, %v155_v21  ;;  %v158_v25 = vld [vmem:[#allocation7 + $0x68] sm:$0xff]  ;;  %v159_v27 = vld [vmem:[#allocation7 + $0x70] sm:$0xff]  ;;  %v160_v28 = vld [vmem:[#allocation7 + $0x78] sm:$0xff]  ;;  %p431_p13 = por %p430_p12, %p429_p11 }
  0x3d   :  { %283 = vmatmul.mubr.msk.f32.vlgmr.msra.gmra.mrb[0].mxu0 %vm70_vm1, %v60_v10  ;;  %v342_v26 = vpack.c.bf16 %v158_v25, %v157_v24  ;;  %v345_v29 = vpack.c.bf16 %v160_v28, %v159_v27  ;;  %v255_v30 = vld [vmem:[%s553_s2] ss:$0 sm:$0xff] }
  0x3e   :  { %328 = vmatpush3.bf16.msra.mxu1 %v327_v11  ;;  %v257_v35 = vld [vmem:[%s555_s4] ss:$0 sm:$0xff]  ;;  %p432_p0 = pnand %p431_p13, %p425_p10 }
  0x3f   :  { %329 = vmatprep.subr.bf16.mxu1 %v457_v0 }
  0x42   :  { %331 = vmatpush3.bf16.msra.mxu1 %v330_v14 }
  0x43   :  { %332 = vmatprep.subr.bf16.mxu1 %v457_v0 }
  0x46   :  { %334 = vmatpush3.bf16.msra.mxu1 %v333_v17 }
  0x47   :  { %335 = vmatprep.subr.bf16.mxu1 %v457_v0 }
  0x4a   :  { %337 = vmatpush3.bf16.msra.mxu1 %v336_v20 }
  0x4b   :  { %338 = vmatprep.subr.bf16.mxu1 %v457_v0 }
  0x4e   :  { %340 = vmatpush3.bf16.msra.mxu1 %v339_v23 }
  0x4f   :  { %341 = vmatprep.subr.bf16.mxu1 %v457_v0 }
  0x52   :  { %343 = vmatpush3.bf16.msra.mxu1 %v342_v26 }
  0x53   :  { %344 = vmatprep.subr.bf16.mxu1 %v457_v0 }
  0x56   :  { %346 = vmatpush3.bf16.msra.mxu1 %v345_v29 }
 0x110   :  { %v140_v31 = vpop.f32.mrb[0].mxu0 }
 0x111   :  { %v141_v32 = vadd.f32 %v255_v30, %v140_v31  ;;  %v284_v33 = vpop.f32.mrb[1].mxu0 }
 0x113   :  { %356 = vtanh.f32 %v141_v32 }
 0x11d   :  { %v357_v34 = vpop.eup %356 }
 0x11e   :  { %318 = vmatmul.mubr.f32.vlgmr.msra.gmra.mrb[0].mxu1 %v357_v34 }
 0x1f1   :  { %v234_v36 = vpop.f32.mrb[0].mxu1 }
 0x1f2   :  { %v235_v37 = vadd.f32 %v257_v35, %v234_v36  ;;  %v319_v38 = vpop.f32.mrb[1].mxu1 }
 0x1f4   :  { %238 = vst [vmem:[#allocation8] sm:$0xff] %v235_v37 }
 0x1f5   :  { %435 = shalt.err (!%p432_p0)
}
 0x1f6   :  { %s436_s11 = scalar_lea.hbm %s556_s5, 128 }
 0x1f7   :  { %p437_p1 = scmp.ne.s32.totalorder %s556_s5, %s436_s11  ;;  %p440_p2 = scmp.lt.u32.totalorder %s436_s11, %s556_s5 }
 0x1f9   :  { %p442_p3 = pnand %p440_p2, %p437_p1 }
 0x1fb   :  { %445 = shalt.err (!%p442_p3)
}
 0x1fc   :  { %248 = dma.vmem_to_hbm [thread:$0]  %s246_s8, 128, %s556_s5, [#allocation4]  }
 0x1fd   :  { %450 = dma.done.wait [#allocation4], 128  }
 0x1fe   :  { %451 = vsyncadd [#allocation4], 4294967168 }
 0x1ff   :  { %252 = vsyncpa [#allocation3], 1 }
 0x200   :  { %253 = vsyncpa [#allocation6], 1 }
 0x201   :  { %254 = vsyncpa [#allocation4], 1 }

</bundles_post_ra>
